<compile_context>
chip_gen: v5e
topology: v5e:2x2
jax: 0.10.0
libtpu: 0.0.40
codegen_flags: <defaults>
</compile_context>

<pallas_src>
import numpy as np
import jax
import jax.numpy as jnp
from jax import lax
from jax.experimental import pallas as pl
from jax.experimental.pallas import tpu as pltpu


# ----------------------------- Pallas kernel --------------------------------
def cfg_denoiser_kernel(z_ref,      # VMEM [Cz, TP]  latent z tile (native dtype)
                        cc_c_ref,   # VMEM [Cc, TP]  cond   c_concat tile
                        cc_u_ref,   # VMEM [Cc, TP]  uncond c_concat tile
                        wz_ref,     # VMEM f32 [C, Cz]  alpha-folded weight for z
                        wcc_ref,    # VMEM f32 [C, Cc]  alpha-folded weight for cond c_concat
                        wcu_ref,    # VMEM f32 [C, Cc]  alpha-folded weight for uncond c_concat
                        b_ref,      # VMEM f32 [C, 1]   effective bias (CFG bias + ctx projection)
                        o_ref):     # VMEM [C, TP]   CFG-combined output tile
    def accumulate(acc, w_ref, x_ref):
        # VPU 1x1-conv: out[c,p] += sum_k w[c,k]*x[k,p]; K<=8 so the MXU would be
        # >97% padding -> unrolled broadcast multiply-add chains instead.
        w = w_ref[...]                          # tiny (C, K) f32
        x = x_ref[...].astype(jnp.float32)      # in-register upcast (no HBM pass)
        for k in range(x_ref.shape[0]):         # static unroll, K <= 8
            term = w[:, k:k + 1] * x[k:k + 1, :]   # (C,1)*(1,TP) -> (C,TP)
            acc = term if acc is None else acc + term
        return acc

    acc = accumulate(None, wz_ref, z_ref)
    acc = accumulate(acc, wcc_ref, cc_c_ref)
    acc = accumulate(acc, wcu_ref, cc_u_ref)
    o_ref[...] = (acc + b_ref[...]).astype(o_ref.dtype)


# ------------------------------- wrapper -------------------------------------
def make_params(key, c_z, c_concat, d_ctx):
    c_in = c_z + c_concat
    k1, k2, k3 = jax.random.split(key, 3)
    return {
        'w':  (jax.random.normal(k1, (c_in, c_z), dtype=jnp.float32) * 0.1),
        'wt': (jax.random.normal(k2, (d_ctx, c_z), dtype=jnp.float32) * 0.1),
        'b':  (jax.random.normal(k3, (1, c_z), dtype=jnp.float32) * 0.1),
    }


def _pick_tile_p(p_pad, cap=8192):
    """Largest 128-multiple tile dividing p_pad, keeping >=2 grid steps when
    possible so the parallel axis shards across both TensorCores on v7x."""
    best = 128
    tp = 128
    while tp <= min(cap, p_pad):
        if p_pad % tp == 0:
            n = p_pad // tp
            if not (p_pad >= 256 and n < 2):
                best = tp
        tp += 128
    return best


def cfg_denoiser_forward(z, sigma, cond, uncond, text_cfg_scale, image_cfg_scale, params):
    """Matches CFGDenoiser.forward. z: NCHW [1, C, H, W]."""
    B, C, H, W = z.shape
    assert B == 1
    P = H * W

    # ---- grid-invariant scalar/tiny-tensor math (hoisted out of the kernel) ----
    sigma0 = jnp.reshape(sigma, (-1,))[0].astype(jnp.float32)     # B==1 asserted
    c_scale = lax.rsqrt(sigma0 * sigma0 + 1.0)
    text = jnp.float32(text_cfg_scale)
    image = jnp.float32(image_cfg_scale)

    wzT = params['w'][:C, :].T.astype(jnp.float32)    # (C, Cz)
    wcT = params['w'][C:, :].T.astype(jnp.float32)    # (C, Cc)
    wtT = params['wt'].T.astype(jnp.float32)          # (C, D)
    b_col = params['b'].T.astype(jnp.float32)         # (C, 1)

    cc_cond_nchw = cond['c_concat'][0]
    cc_uncond_nchw = uncond['c_concat'][0]
    Cc = cc_cond_nchw.shape[1]

    if 'c_crossattn' in cond:
        # result = text*out_cond + (image-text)*out_img_cond + (1-image)*out_uncond
        a_cond = text * c_scale
        a_img = (image - text) * c_scale
        a_unc = (1.0 - image) * c_scale
        a_sum = a_cond + a_img + a_unc

        wz_eff = a_sum * wzT                       # z shared by all 3 branches
        wcc_eff = (a_cond + a_img) * wcT           # c_concat order: (cond, cond, uncond)
        wcu_eff = a_unc * wcT

        ctx_c = cond['c_crossattn'][0][0].astype(jnp.float32)     # (T, D)
        ctx_u = uncond['c_crossattn'][0][0].astype(jnp.float32)   # (T, D)
        # ctx batch order is (cond, uncond, uncond)
        ctx_comb = (a_cond * jnp.mean(ctx_c, axis=0)
                    + (a_img + a_unc) * jnp.mean(ctx_u, axis=0))  # (D,)
        bias_eff = a_sum * b_col + (wtT @ ctx_comb)[:, None]      # (C, 1)
    else:
        # result = text*out_cond + (1-text)*out_uncond (no cross-attn term)
        a_cond = text * c_scale
        a_unc = (1.0 - text) * c_scale
        a_sum = a_cond + a_unc

        wz_eff = a_sum * wzT
        wcc_eff = a_cond * wcT                     # c_concat order: (cond, uncond)
        wcu_eff = a_unc * wcT
        bias_eff = a_sum * b_col

    # ---- big tensors: pure NCHW flatten, native dtype (no wrapper upcast) ----
    z2 = z.reshape(C, P)
    cc_c = cc_cond_nchw.reshape(Cc, P)
    cc_u = cc_uncond_nchw.reshape(Cc, P)

    # Lane-dense spatial dim: pad up to a multiple of 128 (sliced off after).
    P_pad = ((P + 127) // 128) * 128
    if P_pad != P:
        pad = ((0, 0), (0, P_pad - P))
        z2 = jnp.pad(z2, pad)
        cc_c = jnp.pad(cc_c, pad)
        cc_u = jnp.pad(cc_u, pad)

    tile_p = _pick_tile_p(P_pad)
    grid = (P_pad // tile_p,)

    out2d = pl.pallas_call(
        cfg_denoiser_kernel,
        out_shape=jax.ShapeDtypeStruct((C, P_pad), z.dtype),
        grid=grid,
        in_specs=[
            pl.BlockSpec((C, tile_p), lambda i: (0, i)),    # z
            pl.BlockSpec((Cc, tile_p), lambda i: (0, i)),   # cc_cond
            pl.BlockSpec((Cc, tile_p), lambda i: (0, i)),   # cc_uncond
            pl.BlockSpec((C, C), lambda i: (0, 0)),         # wz_eff
            pl.BlockSpec((C, Cc), lambda i: (0, 0)),        # wcc_eff
            pl.BlockSpec((C, Cc), lambda i: (0, 0)),        # wcu_eff
            pl.BlockSpec((C, 1), lambda i: (0, 0)),         # bias_eff
        ],
        out_specs=pl.BlockSpec((C, tile_p), lambda i: (0, i)),
        compiler_params=pltpu.CompilerParams(
            dimension_semantics=("parallel",)),
    )(z2, cc_c, cc_u, wz_eff, wcc_eff, wcu_eff, bias_eff)

    if P_pad != P:
        out2d = out2d[:, :P]
    # (C, P) -> NCHW [1, C, H, W]: pure reshape, no transpose.
    return out2d.reshape(1, C, H, W)


# ---------------- pure-JAX reference (mirrors the PyTorch module) ----------------
# TODO(synk): the inner model is a synthetic linear denoiser; a real U-Net cannot
# be folded into the input/weight side the way this kernel does.
def _inner_model_ref(cfg_z, cfg_sigma, c_cross, c_cat, params):
    xz = jnp.concatenate([cfg_z, c_cat], axis=1)               # [n, Cin, H, W]
    xz = jnp.transpose(xz, (0, 2, 3, 1))                       # [n, H, W, Cin]
    h = jnp.einsum('bhwc,cd->bhwd', xz, params['w'])
    if c_cross is not None:
        ctx_proj = jnp.mean(c_cross, axis=1) @ params['wt']    # [n, C]
    else:
        ctx_proj = jnp.zeros((cfg_z.shape[0], params['w'].shape[1]), jnp.float32)
    c_scale = 1.0 / jnp.sqrt(cfg_sigma ** 2 + 1.0)             # [n]
    out = (h + params['b'][0] + ctx_proj[:, None, None, :]) * c_scale[:, None, None, None]
    return jnp.transpose(out, (0, 3, 1, 2))                    # NCHW [n, C, H, W]


def cfg_denoiser_ref(z, sigma, cond, uncond, text_cfg_scale, image_cfg_scale, params):
    if 'c_crossattn' in cond:
        cfg_z = jnp.repeat(z, 3, axis=0)
        cfg_sigma = jnp.repeat(sigma, 3, axis=0)
        c_cross = jnp.concatenate([cond['c_crossattn'][0],
                                   uncond['c_crossattn'][0],
                                   uncond['c_crossattn'][0]], axis=0)
        c_cat = jnp.concatenate([cond['c_concat'][0],
                                 cond['c_concat'][0],
                                 uncond['c_concat'][0]], axis=0)
        out = _inner_model_ref(cfg_z, cfg_sigma, c_cross, c_cat, params)
        out_cond, out_img_cond, out_uncond = out[0:1], out[1:2], out[2:3]
        return (out_uncond
                + text_cfg_scale * (out_cond - out_img_cond)
                + image_cfg_scale * (out_img_cond - out_uncond))
    else:
        cfg_z = jnp.repeat(z, 2, axis=0)
        cfg_sigma = jnp.repeat(sigma, 2, axis=0)
        c_cat = jnp.concatenate([cond['c_concat'][0],
                                 uncond['c_concat'][0]], axis=0)
        out = _inner_model_ref(cfg_z, cfg_sigma, None, c_cat, params)
        out_cond, out_uncond = out[0:1], out[1:2]
        return out_uncond + text_cfg_scale * (out_cond - out_uncond)


if __name__ == "__main__":
    key = jax.random.PRNGKey(0)
    k_z, k_sig, k_cc, k_uc, k_cat_c, k_cat_u, k_p = jax.random.split(key, 7)

    C, H, W = 4, 16, 16       # latent channels / spatial
    Cc = 4                    # c_concat channels
    T, D = 8, 32              # cross-attn tokens / dim

    z = jax.random.normal(k_z, (1, C, H, W), dtype=jnp.float32)
    sigma = jnp.abs(jax.random.normal(k_sig, (1,), dtype=jnp.float32)) + 0.5
    cond = {
        'c_crossattn': [jax.random.normal(k_cc, (1, T, D), dtype=jnp.float32)],
        'c_concat':    [jax.random.normal(k_cat_c, (1, Cc, H, W), dtype=jnp.float32)],
    }
    uncond = {
        'c_crossattn': [jax.random.normal(k_uc, (1, T, D), dtype=jnp.float32)],
        'c_concat':    [jax.random.normal(k_cat_u, (1, Cc, H, W), dtype=jnp.float32)],
    }
    params = make_params(k_p, C, Cc, D)

    text_cfg_scale = 7.5
    image_cfg_scale = 1.5

    # 3-way CFG (c_crossattn present)
    out3 = cfg_denoiser_forward(z, sigma, cond, uncond,
                                text_cfg_scale, image_cfg_scale, params)
    out3 = jax.block_until_ready(out3)
    ref3 = cfg_denoiser_ref(z, sigma, cond, uncond,
                            text_cfg_scale, image_cfg_scale, params)
    np.testing.assert_allclose(np.asarray(out3), np.asarray(ref3), rtol=1e-5, atol=1e-5)
    assert out3.shape == (1, C, H, W)

    # 2-way CFG fallback (no c_crossattn)
    cond2 = {'c_concat': cond['c_concat']}
    uncond2 = {'c_concat': uncond['c_concat']}
    out2 = cfg_denoiser_forward(z, sigma, cond2, uncond2,
                                text_cfg_scale, image_cfg_scale, params)
    out2 = jax.block_until_ready(out2)
    ref2 = cfg_denoiser_ref(z, sigma, cond2, uncond2,
                            text_cfg_scale, image_cfg_scale, params)
    np.testing.assert_allclose(np.asarray(out2), np.asarray(ref2), rtol=1e-5, atol=1e-5)

    print("KERNEL_OK")
</pallas_src>

<mosaic_0001>
module attributes {stable_mosaic.version = 11 : i64} {
  func.func @cfg_denoiser_kernel(%arg0: i32, %arg1: memref<4x128xf32, #tpu.memory_space<vmem>>, %arg2: memref<4x128xf32, #tpu.memory_space<vmem>>, %arg3: memref<4x128xf32, #tpu.memory_space<vmem>>, %arg4: memref<4x4xf32, #tpu.memory_space<vmem>>, %arg5: memref<4x4xf32, #tpu.memory_space<vmem>>, %arg6: memref<4x4xf32, #tpu.memory_space<vmem>>, %arg7: memref<4x1xf32, #tpu.memory_space<vmem>>, %arg8: memref<4x128xf32, #tpu.memory_space<vmem>>) attributes {dimension_semantics = [#tpu.dimension_semantics<parallel>], iteration_bounds = array<i64: 2>, scalar_prefetch = 0 : i64, scratch_operands = 0 : i64, tpu.core_type = #tpu.core_type<tc>, window_params = [{transform_indices = @transform_0, window_bounds = array<i64: 4, 128>}, {transform_indices = @transform_1, window_bounds = array<i64: 4, 128>}, {transform_indices = @transform_2, window_bounds = array<i64: 4, 128>}, {pipeline_mode = #tpu.pipeline_mode<synchronous>, transform_indices = @transform_3, window_bounds = array<i64: 4, 4>}, {pipeline_mode = #tpu.pipeline_mode<synchronous>, transform_indices = @transform_4, window_bounds = array<i64: 4, 4>}, {pipeline_mode = #tpu.pipeline_mode<synchronous>, transform_indices = @transform_5, window_bounds = array<i64: 4, 4>}, {pipeline_mode = #tpu.pipeline_mode<synchronous>, transform_indices = @transform_6, window_bounds = array<i64: 4, 1>}, {transform_indices = @transform_7, window_bounds = array<i64: 4, 128>}]} {
    %c0 = arith.constant 0 : index
    %c0_0 = arith.constant 0 : index
    %0 = vector.load %arg4[%c0, %c0_0] : memref<4x4xf32, #tpu.memory_space<vmem>>, vector<4x4xf32>
    %c0_1 = arith.constant 0 : index
    %c0_2 = arith.constant 0 : index
    %1 = vector.load %arg1[%c0_1, %c0_2] : memref<4x128xf32, #tpu.memory_space<vmem>>, vector<4x128xf32>
    %2 = vector.extract_strided_slice %0 {offsets = [0, 0], sizes = [4, 1], strides = [1, 1]} : vector<4x4xf32> to vector<4x1xf32>
    %3 = vector.extract_strided_slice %1 {offsets = [0, 0], sizes = [1, 128], strides = [1, 1]} : vector<4x128xf32> to vector<1x128xf32>
    %4 = vector.broadcast %2 : vector<4x1xf32> to vector<4x128xf32>
    %5 = vector.broadcast %3 : vector<1x128xf32> to vector<4x128xf32>
    %6 = arith.mulf %4, %5 : vector<4x128xf32>
    %7 = vector.extract_strided_slice %0 {offsets = [0, 1], sizes = [4, 1], strides = [1, 1]} : vector<4x4xf32> to vector<4x1xf32>
    %8 = vector.extract_strided_slice %1 {offsets = [1, 0], sizes = [1, 128], strides = [1, 1]} : vector<4x128xf32> to vector<1x128xf32>
    %9 = vector.broadcast %7 : vector<4x1xf32> to vector<4x128xf32>
    %10 = vector.broadcast %8 : vector<1x128xf32> to vector<4x128xf32>
    %11 = arith.mulf %9, %10 : vector<4x128xf32>
    %12 = arith.addf %6, %11 : vector<4x128xf32>
    %13 = vector.extract_strided_slice %0 {offsets = [0, 2], sizes = [4, 1], strides = [1, 1]} : vector<4x4xf32> to vector<4x1xf32>
    %14 = vector.extract_strided_slice %1 {offsets = [2, 0], sizes = [1, 128], strides = [1, 1]} : vector<4x128xf32> to vector<1x128xf32>
    %15 = vector.broadcast %13 : vector<4x1xf32> to vector<4x128xf32>
    %16 = vector.broadcast %14 : vector<1x128xf32> to vector<4x128xf32>
    %17 = arith.mulf %15, %16 : vector<4x128xf32>
    %18 = arith.addf %12, %17 : vector<4x128xf32>
    %19 = vector.extract_strided_slice %0 {offsets = [0, 3], sizes = [4, 1], strides = [1, 1]} : vector<4x4xf32> to vector<4x1xf32>
    %20 = vector.extract_strided_slice %1 {offsets = [3, 0], sizes = [1, 128], strides = [1, 1]} : vector<4x128xf32> to vector<1x128xf32>
    %21 = vector.broadcast %19 : vector<4x1xf32> to vector<4x128xf32>
    %22 = vector.broadcast %20 : vector<1x128xf32> to vector<4x128xf32>
    %23 = arith.mulf %21, %22 : vector<4x128xf32>
    %24 = arith.addf %18, %23 : vector<4x128xf32>
    %c0_3 = arith.constant 0 : index
    %c0_4 = arith.constant 0 : index
    %25 = vector.load %arg5[%c0_3, %c0_4] : memref<4x4xf32, #tpu.memory_space<vmem>>, vector<4x4xf32>
    %c0_5 = arith.constant 0 : index
    %c0_6 = arith.constant 0 : index
    %26 = vector.load %arg2[%c0_5, %c0_6] : memref<4x128xf32, #tpu.memory_space<vmem>>, vector<4x128xf32>
    %27 = vector.extract_strided_slice %25 {offsets = [0, 0], sizes = [4, 1], strides = [1, 1]} : vector<4x4xf32> to vector<4x1xf32>
    %28 = vector.extract_strided_slice %26 {offsets = [0, 0], sizes = [1, 128], strides = [1, 1]} : vector<4x128xf32> to vector<1x128xf32>
    %29 = vector.broadcast %27 : vector<4x1xf32> to vector<4x128xf32>
    %30 = vector.broadcast %28 : vector<1x128xf32> to vector<4x128xf32>
    %31 = arith.mulf %29, %30 : vector<4x128xf32>
    %32 = arith.addf %24, %31 : vector<4x128xf32>
    %33 = vector.extract_strided_slice %25 {offsets = [0, 1], sizes = [4, 1], strides = [1, 1]} : vector<4x4xf32> to vector<4x1xf32>
    %34 = vector.extract_strided_slice %26 {offsets = [1, 0], sizes = [1, 128], strides = [1, 1]} : vector<4x128xf32> to vector<1x128xf32>
    %35 = vector.broadcast %33 : vector<4x1xf32> to vector<4x128xf32>
    %36 = vector.broadcast %34 : vector<1x128xf32> to vector<4x128xf32>
    %37 = arith.mulf %35, %36 : vector<4x128xf32>
    %38 = arith.addf %32, %37 : vector<4x128xf32>
    %39 = vector.extract_strided_slice %25 {offsets = [0, 2], sizes = [4, 1], strides = [1, 1]} : vector<4x4xf32> to vector<4x1xf32>
    %40 = vector.extract_strided_slice %26 {offsets = [2, 0], sizes = [1, 128], strides = [1, 1]} : vector<4x128xf32> to vector<1x128xf32>
    %41 = vector.broadcast %39 : vector<4x1xf32> to vector<4x128xf32>
    %42 = vector.broadcast %40 : vector<1x128xf32> to vector<4x128xf32>
    %43 = arith.mulf %41, %42 : vector<4x128xf32>
    %44 = arith.addf %38, %43 : vector<4x128xf32>
    %45 = vector.extract_strided_slice %25 {offsets = [0, 3], sizes = [4, 1], strides = [1, 1]} : vector<4x4xf32> to vector<4x1xf32>
    %46 = vector.extract_strided_slice %26 {offsets = [3, 0], sizes = [1, 128], strides = [1, 1]} : vector<4x128xf32> to vector<1x128xf32>
    %47 = vector.broadcast %45 : vector<4x1xf32> to vector<4x128xf32>
    %48 = vector.broadcast %46 : vector<1x128xf32> to vector<4x128xf32>
    %49 = arith.mulf %47, %48 : vector<4x128xf32>
    %50 = arith.addf %44, %49 : vector<4x128xf32>
    %c0_7 = arith.constant 0 : index
    %c0_8 = arith.constant 0 : index
    %51 = vector.load %arg6[%c0_7, %c0_8] : memref<4x4xf32, #tpu.memory_space<vmem>>, vector<4x4xf32>
    %c0_9 = arith.constant 0 : index
    %c0_10 = arith.constant 0 : index
    %52 = vector.load %arg3[%c0_9, %c0_10] : memref<4x128xf32, #tpu.memory_space<vmem>>, vector<4x128xf32>
    %53 = vector.extract_strided_slice %51 {offsets = [0, 0], sizes = [4, 1], strides = [1, 1]} : vector<4x4xf32> to vector<4x1xf32>
    %54 = vector.extract_strided_slice %52 {offsets = [0, 0], sizes = [1, 128], strides = [1, 1]} : vector<4x128xf32> to vector<1x128xf32>
    %55 = vector.broadcast %53 : vector<4x1xf32> to vector<4x128xf32>
    %56 = vector.broadcast %54 : vector<1x128xf32> to vector<4x128xf32>
    %57 = arith.mulf %55, %56 : vector<4x128xf32>
    %58 = arith.addf %50, %57 : vector<4x128xf32>
    %59 = vector.extract_strided_slice %51 {offsets = [0, 1], sizes = [4, 1], strides = [1, 1]} : vector<4x4xf32> to vector<4x1xf32>
    %60 = vector.extract_strided_slice %52 {offsets = [1, 0], sizes = [1, 128], strides = [1, 1]} : vector<4x128xf32> to vector<1x128xf32>
    %61 = vector.broadcast %59 : vector<4x1xf32> to vector<4x128xf32>
    %62 = vector.broadcast %60 : vector<1x128xf32> to vector<4x128xf32>
    %63 = arith.mulf %61, %62 : vector<4x128xf32>
    %64 = arith.addf %58, %63 : vector<4x128xf32>
    %65 = vector.extract_strided_slice %51 {offsets = [0, 2], sizes = [4, 1], strides = [1, 1]} : vector<4x4xf32> to vector<4x1xf32>
    %66 = vector.extract_strided_slice %52 {offsets = [2, 0], sizes = [1, 128], strides = [1, 1]} : vector<4x128xf32> to vector<1x128xf32>
    %67 = vector.broadcast %65 : vector<4x1xf32> to vector<4x128xf32>
    %68 = vector.broadcast %66 : vector<1x128xf32> to vector<4x128xf32>
    %69 = arith.mulf %67, %68 : vector<4x128xf32>
    %70 = arith.addf %64, %69 : vector<4x128xf32>
    %71 = vector.extract_strided_slice %51 {offsets = [0, 3], sizes = [4, 1], strides = [1, 1]} : vector<4x4xf32> to vector<4x1xf32>
    %72 = vector.extract_strided_slice %52 {offsets = [3, 0], sizes = [1, 128], strides = [1, 1]} : vector<4x128xf32> to vector<1x128xf32>
    %73 = vector.broadcast %71 : vector<4x1xf32> to vector<4x128xf32>
    %74 = vector.broadcast %72 : vector<1x128xf32> to vector<4x128xf32>
    %75 = arith.mulf %73, %74 : vector<4x128xf32>
    %76 = arith.addf %70, %75 : vector<4x128xf32>
    %c0_11 = arith.constant 0 : index
    %c0_12 = arith.constant 0 : index
    %77 = vector.load %arg7[%c0_11, %c0_12] : memref<4x1xf32, #tpu.memory_space<vmem>>, vector<4x1xf32>
    %78 = vector.broadcast %77 : vector<4x1xf32> to vector<4x128xf32>
    %79 = arith.addf %76, %78 : vector<4x128xf32>
    %c0_13 = arith.constant 0 : index
    %c0_14 = arith.constant 0 : index
    %80 = vector.load %arg8[%c0_13, %c0_14] : memref<4x128xf32, #tpu.memory_space<vmem>>, vector<4x128xf32>
    tpu.vector_store %arg8[%c0_13, %c0_14], %79 {strides = array<i32>} : memref<4x128xf32, #tpu.memory_space<vmem>>, vector<4x128xf32>,
    return
  }
  func.func @transform_0(%arg0: i32) -> (i32, i32) {
    %c0_i32 = arith.constant 0 : i32
    %c0_i32_0 = arith.constant 0 : i32
    return %c0_i32, %arg0 : i32, i32
  }
  func.func @transform_1(%arg0: i32) -> (i32, i32) {
    %c0_i32 = arith.constant 0 : i32
    %c0_i32_0 = arith.constant 0 : i32
    return %c0_i32, %arg0 : i32, i32
  }
  func.func @transform_2(%arg0: i32) -> (i32, i32) {
    %c0_i32 = arith.constant 0 : i32
    %c0_i32_0 = arith.constant 0 : i32
    return %c0_i32, %arg0 : i32, i32
  }
  func.func @transform_3(%arg0: i32) -> (i32, i32) {
    %c0_i32 = arith.constant 0 : i32
    %c0_i32_0 = arith.constant 0 : i32
    %c0_i32_1 = arith.constant 0 : i32
    return %c0_i32, %c0_i32_0 : i32, i32
  }
  func.func @transform_4(%arg0: i32) -> (i32, i32) {
    %c0_i32 = arith.constant 0 : i32
    %c0_i32_0 = arith.constant 0 : i32
    %c0_i32_1 = arith.constant 0 : i32
    return %c0_i32, %c0_i32_0 : i32, i32
  }
  func.func @transform_5(%arg0: i32) -> (i32, i32) {
    %c0_i32 = arith.constant 0 : i32
    %c0_i32_0 = arith.constant 0 : i32
    %c0_i32_1 = arith.constant 0 : i32
    return %c0_i32, %c0_i32_0 : i32, i32
  }
  func.func @transform_6(%arg0: i32) -> (i32, i32) {
    %c0_i32 = arith.constant 0 : i32
    %c0_i32_0 = arith.constant 0 : i32
    %c0_i32_1 = arith.constant 0 : i32
    return %c0_i32, %c0_i32_0 : i32, i32
  }
  func.func @transform_7(%arg0: i32) -> (i32, i32) {
    %c0_i32 = arith.constant 0 : i32
    %c0_i32_0 = arith.constant 0 : i32
    return %c0_i32, %arg0 : i32, i32
  }
}

</mosaic_0001>

<bundles_post_ra>
// kernel: tpu_custom_call.1
= control target key start
LH: loop header
LB: loop body
LE: loop exit
PB: predicated region body
PF: predicated region fallthrough
CT: control target
= control target key end

     0   :  { %s1258_s0 = inlined_call_operand.hbm [shape: f32[4,256], index: 0, kind: input, shape index: {}]   ;;  %s1259_s1 = inlined_call_operand.hbm [shape: f32[4,256], index: 1, kind: input, shape index: {}]   ;;  %s1260_s2 = inlined_call_operand.hbm [shape: f32[4,256], index: 2, kind: input, shape index: {}]   ;;  %s1261_s3 = inlined_call_operand.vmem [shape: f32[4,4], index: 3, kind: input, shape index: {}]   ;;  %s1262_s4 = inlined_call_operand.hbm [shape: f32[4,4], index: 4, kind: input, shape index: {}]   ;;  %s1263_s5 = inlined_call_operand.hbm [shape: f32[4,4], index: 5, kind: input, shape index: {}]   ;;  %s1264_s6 = inlined_call_operand.vmem [shape: f32[4,1], index: 6, kind: input, shape index: {}]   ;;  %s1265_s7 = inlined_call_operand.hbm [shape: f32[4,256], index: 7, kind: output, shape index: {}]  }
   0x1   :  { %1273 = sst [smem:[#allocation21_spill]] %s1259_s1 }
   0x2   :  { %1274 = sst [smem:[#allocation22_spill]] %s1262_s4 }
   0x3   :  { %12 = vsyncpa [#allocation3], 0 }
   0x4   :  { %14 = vsyncpa [#allocation3 + $0x1], 0 }
   0x5   :  { %15 = vsyncpa [#allocation6], 0 }
   0x6   :  { %17 = vsyncpa [#allocation6 + $0x1], 0 }
   0x7   :  { %18 = vsyncpa [#allocation9], 0 }
   0x8   :  { %19 = vsyncpa [#allocation4], 0 }
   0x9   :  { %21 = vsyncpa [#allocation4 + $0x1], 0  ;;  %s1036_s24 = smov 0   ;;  %s1038_s25 = smov 0  }
   0xa   :  { %s1040_s26 = smov 0   ;;  %s1042_s27 = smov 0  }
   0xb LB: > { %1275 = sst [smem:[#allocation16_spill]] %s976_s24  ;;  %s1057_s28 = sadd.s32 4294967295, %s988_s27   ;;  %s988_s27 = sphi %s1042_s27, %s1295_s27   ;;  %s984_s26 = sphi %s1040_s26, %s1299_s26   ;;  %s980_s25 = sphi %s1038_s25, %s1298_s25   ;;  %s976_s24 = sphi %s1036_s24, %s1297_s24  }
   0xc   : > { %1276 = sst [smem:[#allocation17_spill]] %s988_s27  ;;  %s648_s29 = sadd.s32 4294967294, %s988_s27  }
   0xd   : > { %p47_p0 = scmp.ne.s32.totalorder %s980_s25, %s976_s24  ;;  %p1272_p1 = scmp.eq.s32.totalorder %s1057_s28, 0 }
   0xe   : > { %p207_p2 = scmp.eq.s32.totalorder %s1057_s28, 1  ;;  %p213_p3 = scmp.eq.s32.totalorder %s648_s29, 1 }
   0xf   : > { %p1066_p4 = por %p1272_p1, %p47_p0  ;;  %p649_p5 = scmp.ge.s32.totalorder %s988_s27, 1 }
  0x10   : > { %p1071_p6 = por %p213_p3, %p47_p0  ;;  %p220_p7 = scmp.lt.s32.totalorder %s988_s27, 3 }
  0x11   : > { %s1280_s4 = sld [smem:[#allocation22_spill]]  ;;  %s990_s13 = smov [#allocation8]  }
  0x12   : > { %s1278_s8 = scalar_select %p1071_p6, 1, 0 }
  0x13   : > { %p1079_p8 = pnand %p649_p5, %p220_p7  ;;  %s237_s14 = sshll.u32 %s990_s13, 4  ;;  %s238_s14 = int_to_ptr.vmem [resolvable:$true] %s237_s14 }
  0x14   : > { %1279 = sst [smem:[#allocation18_spill]] %s1278_s8  ;;  %s1093_s16 = sadd.s32 1, %s988_s27  }
  0x15   : > { %p686_p10 = pneg %p1079_p8  ;;  %1283 = sst [smem:[#allocation19_spill]] %s1093_s16 }
  0x16   : > { %s34_s17 = sadd.s32 1, %s984_s26  ;;  %s31_s18 = ssub.s32 %s988_s27, %s1093_s16 }
  0x17   : > { %s235_s11 = sshll.u32 %s1280_s4, 4  ;;  %p1088_p11 = pnand %p686_p10, %p1272_p1  ;;  %s236_s11 = int_to_ptr.hbm [resolvable:$true] %s235_s11 }
  0x18   : > { %p32_p12 = scmp.eq.s32.totalorder %s31_s18, 0  ;;  %p41_p13 = scmp.ne.s32.totalorder %s984_s26, %s980_s25 }
  0x19   : > { %689 = dma.hbm_to_vmem [thread:$0]  (!%p1088_p11), %s236_s11, 64, %s238_s14, [#allocation9]  }
  0x1a   : > { %p42_p0 = scmp.eq.s32.totalorder %s988_s27, 0  ;;  %p709_p3 = scmp.lt.s32.totalorder %s988_s27, 2 }
  0x1b   : > { %s1105_s19 = scalar_select %p32_p12, %s984_s26, %s34_s17  }
  0x1c   : > { %p43_p5 = por %p42_p0, %p41_p13  ;;  %p1109_p7 = por %p207_p2, %p41_p13 }
  0x1d   : > { %1284 = sst [smem:[#allocation20_spill]] %s1105_s19  ;;  %s1266_s21 = sand.u32 1, %s984_s26  }
  0x1e   : > { %s1115_s22 = sshll.u32 %s988_s27, 2  ;;  %s1119_s23 = sshll.u32 %s1266_s21, 2 }
  0x1f   : > { %p1121_p10 = pnand %p709_p3, %p43_p5  ;;  %s282_s9 = sand.u32 1, %s988_s27  }
  0x20   : > { %s1287_s1 = sld [smem:[#allocation21_spill]]  ;;  %s286_s14 = scalar_lea.vmem [#allocation5], %s1119_s23 }
  0x21   : > { %s294_s17 = sshll.u32 %s286_s14, 4  ;;  %s247_s19 = sshll.u32 %s1263_s5, 4  ;;  %s295_s17 = int_to_ptr.vmem [resolvable:$true] %s294_s17  ;;  %s248_s19 = int_to_ptr.hbm [resolvable:$true] %s247_s19 }
  0x22   : > { %s1134_s16 = scalar_lea.sflag [#allocation6], %s282_s9  ;;  %p798_p12 = pneg %p1121_p10 }
  0x26   : > { %s290_s13 = scalar_lea.hbm %s1287_s1, %s1115_s22 }
  0x27   : > { %s292_s18 = sshll.u32 %s290_s13, 4  ;;  %s801_s13 = scalar_lea.hbm %s1287_s1, 8  ;;  %s293_s18 = int_to_ptr.hbm [resolvable:$true] %s292_s18 }
  0x28   : > { %s794_s8 = sshra.s32 %s293_s18, 4  ;;  %s795_s8 = int_to_ptr.hbm [resolvable:$true] %s794_s8 }
  0x29   : > { %s796_s24 = scalar_lea.hbm %s795_s8, 4  ;;  %p802_p3 = scmp.lt.s32.totalorder %s795_s8, %s1287_s1 }
  0x2a   : > { %p797_p2 = scmp.ne.s32.totalorder %s795_s8, %s796_s24  ;;  %p803_p5 = scmp.lt.s32.totalorder %s801_s13, %s796_s24 }
  0x2c   : > { %p799_p13 = pnand %p798_p12, %p797_p2  ;;  %p804_p9 = por %p803_p5, %p802_p3 }
  0x2e   : > { %p800_p0 = pneg %p799_p13 }
  0x30   : > { %p805_p1 = pnand %p804_p9, %p800_p0 }
  0x32   : > { %808 = shalt.err (!%p805_p1)
}
  0x33   : > { %699 = dma.hbm_to_vmem [thread:$0]  (!%p1121_p10), %s293_s18, 64, %s295_s17, %s1134_s16  }
  0x34   : > { %s991_s4 = smov [#allocation10]   ;;  %s271_s8 = scalar_lea.hbm %s1258_s0, %s1115_s22 }
  0x35   : > { %s249_s21 = sshll.u32 %s991_s4, 4  ;;  %s267_s9 = scalar_lea.vmem [#allocation2], %s1119_s23  ;;  %s250_s21 = int_to_ptr.vmem [resolvable:$true] %s249_s21 }
  0x36   : > { %692 = dma.hbm_to_vmem [thread:$0]  (!%p1088_p11), %s248_s19, 64, %s250_s21, [#allocation9]  }
  0x37   : > { %s275_s10 = sshll.u32 %s267_s9, 4  ;;  %s273_s11 = sshll.u32 %s271_s8, 4  ;;  %s276_s10 = int_to_ptr.vmem [resolvable:$true] %s275_s10  ;;  %s274_s11 = int_to_ptr.hbm [resolvable:$true] %s273_s11 }
  0x38   : > { %s1288_s13 = sand.u32 1, %s984_s26   ;;  %s854_s1 = sshra.s32 %s274_s11, 4  ;;  %s855_s1 = int_to_ptr.hbm [resolvable:$true] %s854_s1 }
  0x39   : > { %s264_s14 = scalar_lea.sflag [#allocation3], %s1288_s13  ;;  %s856_s17 = scalar_lea.hbm %s855_s1, 4 }
  0x3a   : > { %p857_p1 = scmp.ne.s32.totalorder %s855_s1, %s856_s17  ;;  %s861_s18 = scalar_lea.hbm %s1258_s0, 8 }
  0x3b   : > { %p862_p11 = scmp.lt.s32.totalorder %s855_s1, %s1258_s0  ;;  %p863_p13 = scmp.lt.s32.totalorder %s861_s18, %s856_s17 }
  0x3c   : > { %p859_p9 = pnand %p857_p1, %p798_p12 }
  0x3d   : > { %p864_p0 = por %p863_p13, %p862_p11 }
  0x3e   : > { %p860_p2 = pneg %p859_p9 }
  0x40   : > { %p865_p3 = pnand %p864_p0, %p860_p2 }
  0x42   : > { %868 = shalt.err (!%p865_p3)
}
  0x43   : > { %696 = dma.hbm_to_vmem [thread:$0]  (!%p1121_p10), %s274_s11, 64, %s276_s10, %s264_s14  }
  0x44   : > { %s309_s8 = scalar_lea.hbm %s1260_s2, %s1115_s22  ;;  %s305_s9 = scalar_lea.vmem [#allocation7], %s1119_s23 }
  0x45   : > { %s313_s13 = sshll.u32 %s305_s9, 4  ;;  %s311_s15 = sshll.u32 %s309_s8, 4  ;;  %s314_s13 = int_to_ptr.vmem [resolvable:$true] %s313_s13  ;;  %s312_s15 = int_to_ptr.hbm [resolvable:$true] %s311_s15 }
  0x46   : > { %s884_s1 = sshra.s32 %s312_s15, 4  ;;  %s891_s10 = scalar_lea.hbm %s1260_s2, 8  ;;  %s885_s1 = int_to_ptr.hbm [resolvable:$true] %s884_s1 }
  0x47   : > { %s886_s17 = scalar_lea.hbm %s885_s1, 4  ;;  %p892_p2 = scmp.lt.s32.totalorder %s885_s1, %s1260_s2 }
  0x48   : > { %p887_p5 = scmp.ne.s32.totalorder %s885_s1, %s886_s17  ;;  %p893_p11 = scmp.lt.s32.totalorder %s891_s10, %s886_s17 }
  0x4a   : > { %p889_p1 = pnand %p887_p5, %p798_p12  ;;  %p894_p13 = por %p893_p11, %p892_p2 }
  0x4c   : > { %p890_p9 = pneg %p889_p1 }
  0x4e   : > { %p895_p0 = pnand %p894_p13, %p890_p9 }
  0x50   : > { %898 = shalt.err (!%p895_p0)
}
  0x51   : > { %702 = dma.hbm_to_vmem [thread:$0]  (!%p1121_p10), %s312_s15, 64, %s314_s13, %s1134_s16  }
  0x52   : > { %322 = sbr.rel (%p1079_p8) target bundleno = 256 (0x100), region = 48  ;;  %s1190_s22 = sand.u32 (!%p1079_p8), 1, %s980_s25  }
  0x53   : > { %s1193_s23 = sshll.u32 (!%p1079_p8), %s1190_s22, 2  ;;  %s325_s4 = scalar_lea.sflag (!%p1079_p8), [#allocation3], %s1190_s22 }
  0x54   : > { %s328_s21 = scalar_lea.vmem (!%p1079_p8), [#allocation2], %s1193_s23 }
  0x57   : > { %959 = dma.done.wait (%p1066_p4), %s325_s4, 64  }
  0x58   : > { %961 = vsyncadd (%p1066_p4), %s325_s4, 4294967232  ;;  %s334_s12 = sand.u32 1, %s1057_s28   ;;  %s338_s29 = scalar_lea.vmem [#allocation5], %s1193_s23 }
  0x59   : > { %s335_s16 = scalar_lea.sflag [#allocation6], %s334_s12 }
  0x5a   : > { %963 = dma.done.wait (%p1066_p4), %s335_s16, 128  }
  0x5b   : > { %965 = vsyncadd (%p1066_p4), %s335_s16, 4294967168  ;;  %s348_s27 = scalar_lea.vmem [#allocation7], %s1193_s23  ;;  %p1289_p8 = scmp.eq.s32.totalorder %s1057_s28, 0 }
  0x5d   : > { %967 = dma.done.wait (%p1289_p8), [#allocation9], 128   ;;  %p1290_p10 = pmov %p1289_p8 }
  0x5e   : > { %v992_v0 = vmov 2   ;;  %v993_v1 = vmov 0   ;;  %v400_v2 = vld [vmem:[%s1261_s3] sm:$0xf]  ;;  %v430_v3 = vld [vmem:[#allocation8] sm:$0xf] }
  0x5f   : > { %969 = vsyncadd (%p1290_p10), [#allocation9], 4294967168  ;;  %753 = vset.pattern.permute.xlu1 %v992_v0  ;;  %751 = vset.pattern.permute.xlu0 %v993_v1  ;;  %v994_v4 = vmov 3   ;;  %v995_v5 = vmov 1   ;;  %v461_v6 = vld [vmem:[#allocation10] sm:$0xf] }
  0x60   : > { %755 = vset.pattern.permute.xlu2 %v993_v1  ;;  %417 = vperm.xlu1 %753, %v400_v2   ;;  %v492_v7 = vld [vmem:[%s1264_s6] sm:$0xf]  ;;  %v431_v15 = vld [vmem:[%s338_s29] sm:$0xf]  ;;  %v462_v38 = vld [vmem:[%s348_s27] sm:$0xf] }
  0x61   : > { %404 = vperm.xlu0 %751, %v400_v2   ;;  %434 = vperm.xlu2 %755, %v430_v3   ;;  %v401_v11 = vld [vmem:[%s328_s21] sm:$0xf]  ;;  %v437_v23 = vperm.slane %v431_v15, 0  ;;  %v444_v27 = vperm.slane %v431_v15, 1  ;;  %v451_v28 = vperm.slane %v431_v15, 2  ;;  %v458_v35 = vperm.slane %v431_v15, 3 }
  0x62   : > { %v407_v12 = vperm.slane %v401_v11, 0  ;;  %v413_v13 = vperm.slane %v401_v11, 1  ;;  %v420_v14 = vperm.slane %v401_v11, 2  ;;  %v427_v19 = vperm.slane %v401_v11, 3  ;;  %s667_s13 = sshll.u32 %s1057_s28, 2  ;;  %s399_s19 = scalar_lea.vmem [#allocation11], %s1193_s23 }
  0x63   : > { %v468_v41 = vperm.slane %v462_v38, 0  ;;  %v475_v43 = vperm.slane %v462_v38, 1  ;;  %v482_v48 = vperm.slane %v462_v38, 2  ;;  %v489_v53 = vperm.slane %v462_v38, 3  ;;  %s511_s17 = scalar_lea.hbm %s1265_s7, %s667_s13  ;;  %s513_s18 = sshll.u32 %s399_s19, 4  ;;  %s514_s18 = int_to_ptr.vmem [resolvable:$true] %s513_s18 }
  0x64   : > { %s515_s10 = sshll.u32 %s511_s17, 4  ;;  %s501_s28 = scalar_lea.sflag [#allocation4], %s1190_s22  ;;  %s516_s10 = int_to_ptr.hbm [resolvable:$true] %s515_s10 }
  0x65   : > { %s928_s11 = sshra.s32 %s516_s10, 4  ;;  %s934_s12 = scalar_lea.hbm %s1265_s7, 8  ;;  %s929_s11 = int_to_ptr.hbm [resolvable:$true] %s928_s11 }
  0x66   : > { %s930_s14 = scalar_lea.hbm %s929_s11, 4  ;;  %p935_p5 = scmp.lt.s32.totalorder %s929_s11, %s1265_s7 }
  0x67   : > { %p931_p4 = scmp.ne.s32.totalorder %s929_s11, %s930_s14  ;;  %p936_p1 = scmp.lt.s32.totalorder %s934_s12, %s930_s14 }
  0x68   : > { %754 = vset.pattern.permute.xlu1 %v994_v4 }
  0x69   : > { %752 = vset.pattern.permute.xlu0 %v995_v5  ;;  %424 = vperm.xlu1 %754, %v400_v2   ;;  %p932_p12 = pnand %p931_p4, %p1109_p7  ;;  %p937_p9 = por %p936_p1, %p935_p5 }
  0x6a   : > { %410 = vperm.xlu0 %752, %v400_v2   ;;  %756 = vset.pattern.permute.xlu2 %v995_v5 }
  0x6b   : > { %441 = vperm.xlu2 %756, %v430_v3   ;;  %p933_p3 = pneg %p932_p12 }
  0x6d   : > { %p938_p2 = pnand %p937_p9, %p933_p3 }
  0x71   : > { %757 = vset.pattern.permute.xlu1 %v992_v0 }
  0x72   : > { %759 = vset.pattern.permute.xlu0 %v993_v1  ;;  %448 = vperm.xlu1 %757, %v430_v3  }
  0x73   : > { %465 = vperm.xlu0 %759, %v461_v6   ;;  %758 = vset.pattern.permute.xlu2 %v994_v4 }
  0x74   : > { %455 = vperm.xlu2 %758, %v430_v3  }
  0x7a   : > { %760 = vset.pattern.permute.xlu1 %v995_v5 }
  0x7b   : > { %472 = vperm.xlu1 %760, %v461_v6  }
  0x7c   : > { %761 = vset.pattern.permute.xlu2 %v992_v0 }
  0x7d   : > { %479 = vperm.xlu2 %761, %v461_v6  }
  0x83   : > { %762 = vset.pattern.permute.xlu1 %v994_v4 }
  0x84   : > { %486 = vperm.xlu1 %762, %v461_v6  }
  0x85   : > { %763 = vset.pattern.permute.xlu2 %v993_v1 }
  0x86   : > { %495 = vperm.xlu2 %763, %v492_v7  }
  0xbb   : > { %v435_v8 = vpop.permute.xlu2 %434 }
  0xbc   : > { %v438_v29 = vmul.f32 %v437_v23, %v435_v8 }
  0xc5   : > { %v442_v21 = vpop.permute.xlu2 %441 }
  0xc6   : > { %v445_v32 = vmul.f32 %v444_v27, %v442_v21 }
  0xce   : > { %v456_v37 = vpop.permute.xlu2 %455 }
  0xcf   : > { %v459_v40 = vmul.f32 %v458_v35, %v456_v37 }
  0xd2   : > { %v418_v9 = vpop.permute.xlu1 %417 }
  0xd3   : > { %v405_v10 = vpop.permute.xlu0 %404  ;;  %v421_v22 = vmul.f32 %v420_v14, %v418_v9 }
  0xd4   : > { %v408_v18 = vmul.f32 %v407_v12, %v405_v10 }
  0xd7   : > { %v480_v49 = vpop.permute.xlu2 %479 }
  0xd8   : > { %v483_v52 = vmul.f32 %v482_v48, %v480_v49 }
  0xdb   : > { %v425_v16 = vpop.permute.xlu1 %424 }
  0xdc   : > { %v411_v17 = vpop.permute.xlu0 %410  ;;  %v428_v25 = vmul.f32 %v427_v19, %v425_v16 }
  0xdd   : > { %v414_v20 = vmul.f32 %v413_v13, %v411_v17 }
  0xdf   : > { %v415_v24 = vadd.f32 %v414_v20, %v408_v18 }
  0xe0   : > { %v496_v57 = vpop.permute.xlu2 %495 }
  0xe1   : > { %v422_v26 = vadd.f32 %v421_v22, %v415_v24 }
  0xe3   : > { %v429_v30 = vadd.f32 %v428_v25, %v422_v26 }
  0xe4   : > { %v449_v33 = vpop.permute.xlu1 %448 }
  0xe5   : > { %v439_v31 = vadd.f32 %v438_v29, %v429_v30  ;;  %v452_v34 = vmul.f32 %v451_v28, %v449_v33  ;;  %v466_v42 = vpop.permute.xlu0 %465 }
  0xe6   : > { %v469_v45 = vmul.f32 %v468_v41, %v466_v42 }
  0xe7   : > { %v446_v36 = vadd.f32 %v445_v32, %v439_v31 }
  0xe9   : > { %v453_v39 = vadd.f32 %v452_v34, %v446_v36 }
  0xeb   : > { %v460_v44 = vadd.f32 %v459_v40, %v453_v39 }
  0xed   : > { %v473_v46 = vpop.permute.xlu1 %472  ;;  %v470_v50 = vadd.f32 %v469_v45, %v460_v44 }
  0xee   : > { %v476_v47 = vmul.f32 %v475_v43, %v473_v46 }
  0xf0   : > { %v477_v51 = vadd.f32 %v476_v47, %v470_v50 }
  0xf2   : > { %v484_v55 = vadd.f32 %v483_v52, %v477_v51 }
  0xf6   : > { %v487_v54 = vpop.permute.xlu1 %486 }
  0xf7   : > { %v490_v56 = vmul.f32 %v489_v53, %v487_v54 }
  0xf9   : > { %v491_v58 = vadd.f32 %v490_v56, %v484_v55 }
  0xfb   : > { %v498_v59 = vadd.f32 %v496_v57, %v491_v58 }
  0xfd   : > { %499 = vst [vmem:[%s399_s19] sm:$0xf] %v498_v59 }
  0xfe   : > { %941 = shalt.err (!%p938_p2)
}
  0xff   : > { %684 = dma.vmem_to_hbm [thread:$0]  (%p1109_p7), %s514_s18, 64, %s516_s10, %s501_s28  }
 0x100 PF: > { %s1291_s22 = sld [smem:[#allocation16_spill]] }
 0x101   : > { %s1293_s27 = sld [smem:[#allocation17_spill]] }
 0x106   : > { %s527_s24 = sand.u32 1, %s1291_s22  }
 0x107   : > { %p1294_p11 = scmp.ge.s32.totalorder %s1293_s27, 2  ;;  %s528_s8 = scalar_lea.sflag [#allocation4], %s527_s24 }
 0x109   : > { %p704_p13 = pnand %p1294_p11, %p1071_p6 }
 0x10b   : > { %p705_p0 = pneg %p704_p13 }
 0x10d   : > { %971 = dma.done.wait (%p705_p0), %s528_s8, 64  }
 0x10e   : > { %973 = vsyncadd (%p705_p0), %s528_s8, 4294967232  ;;  %s1295_s27 = sld [smem:[#allocation19_spill]]  ;;  %s1297_s24 = smov %s980_s25 }
 0x10f   : > { %s1296_s30 = sld [smem:[#allocation20_spill]]  ;;  %s1298_s25 = smov %s984_s26 }
 0x114   : > { %p24_p8 = scmp.ge.s32.totalorder %s1295_s27, 4  }
 0x115   : > { %s1299_s26 = smov %s1296_s30 }
 0x116   :  { %26 = sbr.rel (!%p24_p8) target bundleno = 11 (0xb), region = 125 }
 0x11b   :  { %534 = vsyncpa [#allocation3], 1 }
 0x11c   :  { %536 = vsyncpa [#allocation3 + $0x1], 1 }
 0x11d   :  { %537 = vsyncpa [#allocation6], 1 }
 0x11e   :  { %539 = vsyncpa [#allocation6 + $0x1], 1 }
 0x11f   :  { %540 = vsyncpa [#allocation9], 1 }
 0x120   :  { %541 = vsyncpa [#allocation4], 1 }
 0x121   :  { %543 = vsyncpa [#allocation4 + $0x1], 1 }

</bundles_post_ra>
